<compile_context>
chip_gen: v7x
topology: tpu7x:2x2x1
jax: 0.10.0
libtpu: 0.0.40
codegen_flags: <defaults>
</compile_context>

<pallas_src>
import functools
import math

import jax
import jax.numpy as jnp
from jax import lax
from jax.experimental import pallas as pl
from jax.experimental.pallas import tpu as pltpu


# MXU operand dtype (accumulation is always f32 via preferred_element_type).
# Elementwise / softmax math stays f32 (v5e has no bf16 VPU/EUP).
MXU_DTYPE = jnp.bfloat16


def _pick_row_tile(m, cap=256):
    """Largest sublane-friendly row tile; prefer an even grid-step count so
    v7x's two TensorCores get balanced 'parallel' work."""
    cands = [t for t in (512, 256, 128, 64, 32, 16, 8)
             if t <= cap and t <= m and m % t == 0]
    for t in cands:
        if (m // t) % 2 == 0:
            return t
    for t in cands:
        if m // t >= 2:
            return t
    return m


def _pick_q_tile(sq, cap=256):
    """Query tile for attention: as large as possible (batch axis already
    provides parallel grid steps)."""
    for t in (256, 128, 64, 32, 16, 8):
        if t <= cap and t <= sq and sq % t == 0:
            return t
    return sq


# ---------------------------------------------------------------------------
# Linear projection kernel:  y = x @ W + b     (W stored [in, out])
# ---------------------------------------------------------------------------
def _linear_kernel(x_ref, w_ref, b_ref, o_ref):
    o_ref[...] = (
        jnp.dot(x_ref[...], w_ref[...], preferred_element_type=jnp.float32)
        + b_ref[...]
    ).astype(o_ref.dtype)


def linear(x2d, w, b):
    m, d_in = x2d.shape
    d_out = w.shape[1]
    tm = _pick_row_tile(m)
    flops = 2 * m * d_in * d_out
    bytes_accessed = 4 * (m * d_in + d_in * d_out + d_out + m * d_out)
    return pl.pallas_call(
        _linear_kernel,
        out_shape=jax.ShapeDtypeStruct((m, d_out), jnp.float32),
        grid=(m // tm,),
        in_specs=[
            pl.BlockSpec((tm, d_in), lambda i: (i, 0)),      # activations
            pl.BlockSpec((d_in, d_out), lambda i: (0, 0)),   # weight (resident)
            pl.BlockSpec((1, d_out), lambda i: (0, 0)),      # bias (resident)
        ],
        out_specs=pl.BlockSpec((tm, d_out), lambda i: (i, 0)),
        compiler_params=pltpu.CompilerParams(
            dimension_semantics=("parallel",)),
        cost_estimate=pl.CostEstimate(flops=flops, transcendentals=0,
                                      bytes_accessed=bytes_accessed),
    )(x2d, w, b)


# ---------------------------------------------------------------------------
# Multi-head attention kernel: all heads in one block, full context resident.
# ---------------------------------------------------------------------------
def _mha_kernel(q_ref, kv_ref, mask_ref, o_ref, *, num_heads, head_dim):
    h_all = num_heads * head_dim
    q = q_ref[...]                        # (tq, H)  f32; score scale folded in Wq
    kv = kv_ref[...]                      # (Sk, 2H) f32 fused K|V
    k = kv[:, :h_all]
    v = kv[:, h_all:]
    mask = mask_ref[...]                  # (1, Sk)  additive f32 mask

    outs = []
    for h in range(num_heads):            # static unroll; per-head 2-D matmuls
        lo, hi = h * head_dim, (h + 1) * head_dim
        qh = q[:, lo:hi].astype(MXU_DTYPE)
        kh = k[:, lo:hi].astype(MXU_DTYPE)
        vh = v[:, lo:hi].astype(MXU_DTYPE)

        # scores: contract the head dim on the MXU (no explicit transpose)
        s = lax.dot_general(qh, kh, (((1,), (1,)), ((), ())),
                            preferred_element_type=jnp.float32)
        s = s + mask                                    # (tq, Sk)

        # full-row softmax in f32 (context is resident -> no online recurrence)
        m = s.max(axis=-1, keepdims=True)
        p = jnp.exp(s - m)
        l = p.sum(axis=-1, keepdims=True)

        ctx = jnp.dot(p.astype(MXU_DTYPE), vh,
                      preferred_element_type=jnp.float32)   # (tq, head_dim)
        outs.append(ctx * pl.reciprocal(l, approx=True))

    # TODO(synk): nn.Dropout(attention_probs) is train-time only; identity at eval.
    # Merged-heads output written directly in [B, Sq, H] layout (no transposes).
    o_ref[...] = jnp.concatenate(outs, axis=-1).astype(o_ref.dtype)


def multi_head_attention(q, kv, mask3, *, num_heads):
    B, Sq, H = q.shape
    _, Sk, H2 = kv.shape
    assert H2 == 2 * H
    head_dim = H // num_heads
    tq = _pick_q_tile(Sq)

    # Whole-context K/V resident in VMEM. Budget against v7x's 64 MiB VMEM
    # (double-buffered f32 block), leaving headroom for Q / mask / output.
    kv_block_bytes = 2 * Sk * H2 * 4
    if kv_block_bytes > 24 * 1024 * 1024:
        # TODO(synk): add a flash-style kv-tiled (online-softmax) fallback for
        # contexts that do not fit VMEM; unnecessary at these shapes.
        raise NotImplementedError("context too large for resident-KV kernel")

    flops = 2 * 2 * B * num_heads * Sq * Sk * head_dim       # QK^T + PV
    transcendentals = B * num_heads * Sq * Sk                 # exp
    bytes_accessed = 4 * (B * Sq * H + B * Sk * H2 + B * Sk + B * Sq * H)

    return pl.pallas_call(
        functools.partial(_mha_kernel, num_heads=num_heads, head_dim=head_dim),
        out_shape=jax.ShapeDtypeStruct((B, Sq, H), jnp.float32),
        grid=(B, Sq // tq),
        in_specs=[
            pl.BlockSpec((None, tq, H), lambda b, i: (b, i, 0)),    # Q  [B,Sq,H]
            pl.BlockSpec((None, Sk, H2), lambda b, i: (b, 0, 0)),   # KV [B,Sk,2H]
            pl.BlockSpec((None, 1, Sk), lambda b, i: (b, 0, 0)),    # mask (resident per batch)
        ],
        out_specs=pl.BlockSpec((None, tq, H), lambda b, i: (b, i, 0)),
        compiler_params=pltpu.CompilerParams(
            dimension_semantics=("parallel", "parallel"),
            vmem_limit_bytes=32 * 1024 * 1024),
        cost_estimate=pl.CostEstimate(flops=flops,
                                      transcendentals=transcendentals,
                                      bytes_accessed=bytes_accessed),
    )(q, kv, mask3)


# ---------------------------------------------------------------------------
# Module wrapper (BertAttention.forward, eval path)
# ---------------------------------------------------------------------------
def bert_attention(hidden_states, context, params, num_heads,
                   attention_mask=None):
    B, Sq, H = hidden_states.shape
    _, Sk, Dctx = context.shape
    d_h = H // num_heads
    scale = 1.0 / math.sqrt(d_h)

    # Fold the 1/sqrt(head_dim) score scale into the query projection (free).
    wq = params["wq"] * scale
    bq = params["bq"] * scale
    # Fuse K and V projections -> single 2H-wide (lane-dense) output, one
    # HBM read of `context`.
    wkv = jnp.concatenate([params["wk"], params["wv"]], axis=1)   # (Dctx, 2H)
    bkv = jnp.concatenate([params["bk"], params["bv"]], axis=1)   # (1, 2H)

    q = linear(hidden_states.reshape(B * Sq, H), wq, bq).reshape(B, Sq, H)
    kv = linear(context.reshape(B * Sk, Dctx), wkv, bkv).reshape(B, Sk, 2 * H)

    if attention_mask is None:
        mask3 = jnp.zeros((B, 1, Sk), jnp.float32)
    else:
        assert attention_mask.size == B * Sk, (
            "expected an additive key mask with B*Sk elements "
            "(e.g. the standard [B,1,1,Sk] extended attention mask)")
        mask3 = attention_mask.reshape(B, 1, Sk).astype(jnp.float32)

    # TODO(synk): 'output_attention' return path depends on a global `args`
    # dict in the original code; only the default (context_layer) path is built.
    return multi_head_attention(q, kv, mask3, num_heads=num_heads)


# ---------------------------------------------------------------------------
# Parameters + pure-JAX reference
# ---------------------------------------------------------------------------
def make_params(key, hidden, ctx_dim):
    ks = jax.random.split(key, 6)
    return {
        "wq": 0.02 * jax.random.normal(ks[0], (hidden, hidden), jnp.float32),
        "bq": 0.02 * jax.random.normal(ks[1], (1, hidden), jnp.float32),
        "wk": 0.02 * jax.random.normal(ks[2], (ctx_dim, hidden), jnp.float32),
        "bk": 0.02 * jax.random.normal(ks[3], (1, hidden), jnp.float32),
        "wv": 0.02 * jax.random.normal(ks[4], (ctx_dim, hidden), jnp.float32),
        "bv": 0.02 * jax.random.normal(ks[5], (1, hidden), jnp.float32),
    }


def reference(hidden_states, context, params, num_heads, attention_mask=None):
    with jax.default_matmul_precision("float32"):
        B, Sq, H = hidden_states.shape
        Sk = context.shape[1]
        d_h = H // num_heads
        q = hidden_states @ params["wq"] + params["bq"]
        k = context @ params["wk"] + params["bk"]
        v = context @ params["wv"] + params["bv"]
        q = q.reshape(B, Sq, num_heads, d_h).transpose(0, 2, 1, 3)
        k = k.reshape(B, Sk, num_heads, d_h).transpose(0, 2, 1, 3)
        v = v.reshape(B, Sk, num_heads, d_h).transpose(0, 2, 1, 3)
        s = jnp.einsum("bhqd,bhkd->bhqk", q, k) / math.sqrt(d_h)
        if attention_mask is not None:
            s = s + attention_mask[:, None, None, :]
        p = jax.nn.softmax(s, axis=-1)
        ctx = jnp.einsum("bhqk,bhkd->bhqd", p, v)
        return ctx.transpose(0, 2, 1, 3).reshape(B, Sq, H)


if __name__ == "__main__":
    # Small cross-attention config: hidden=64, 4 heads (head_dim=16),
    # query seq 32, context seq 384 with ctx_dim=48 (ctx_dim != hidden).
    B, Sq, Sk = 2, 32, 384
    H, NUM_HEADS, CTX_DIM = 64, 4, 48

    key = jax.random.PRNGKey(0)
    kh, kc, kp = jax.random.split(key, 3)
    hidden_states = jax.random.normal(kh, (B, Sq, H), jnp.float32)
    context = jax.random.normal(kc, (B, Sk, CTX_DIM), jnp.float32)

    # Standard BERT-style additive mask (0 for valid, -10000 for padded keys).
    lengths = jnp.array([Sk, Sk - 100], jnp.int32)
    attention_mask = jnp.where(
        jnp.arange(Sk)[None, :] < lengths[:, None], 0.0, -10000.0
    ).astype(jnp.float32)

    params = make_params(kp, H, CTX_DIM)

    out = bert_attention(hidden_states, context, params, NUM_HEADS,
                         attention_mask)
    out = jax.block_until_ready(out)

    ref = reference(hidden_states, context, params, NUM_HEADS, attention_mask)
    assert out.shape == (B, Sq, H)
    max_err = float(jnp.abs(out - ref).max())
    # bf16 MXU operands (f32 accumulate) + approx reciprocal -> looser tolerance
    # than a pure-f32 kernel (per review guidance).
    assert jnp.allclose(out, ref, atol=1e-2, rtol=1e-2), f"max err {max_err}"
    print("KERNEL_OK")
</pallas_src>

<mosaic_0001>
module attributes {stable_mosaic.version = 11 : i64} {
  func.func @_linear_kernel(%arg0: i32, %arg1: memref<32x64xf32, #tpu.memory_space<vmem>>, %arg2: memref<64x64xf32, #tpu.memory_space<vmem>>, %arg3: memref<1x64xf32, #tpu.memory_space<vmem>>, %arg4: memref<32x64xf32, #tpu.memory_space<vmem>>) attributes {dimension_semantics = [#tpu.dimension_semantics<parallel>], iteration_bounds = array<i64: 2>, scalar_prefetch = 0 : i64, scratch_operands = 0 : i64, tpu.core_type = #tpu.core_type<tc>, window_params = [{transform_indices = @transform_0, window_bounds = array<i64: 32, 64>}, {pipeline_mode = #tpu.pipeline_mode<synchronous>, transform_indices = @transform_1, window_bounds = array<i64: 64, 64>}, {pipeline_mode = #tpu.pipeline_mode<synchronous>, transform_indices = @transform_2, window_bounds = array<i64: 1, 64>}, {transform_indices = @transform_3, window_bounds = array<i64: 32, 64>}]} {
    %c0 = arith.constant 0 : index
    %c0_0 = arith.constant 0 : index
    %0 = vector.load %arg1[%c0, %c0_0] : memref<32x64xf32, #tpu.memory_space<vmem>>, vector<32x64xf32>
    %c0_1 = arith.constant 0 : index
    %c0_2 = arith.constant 0 : index
    %1 = vector.load %arg2[%c0_1, %c0_2] : memref<64x64xf32, #tpu.memory_space<vmem>>, vector<64x64xf32>
    %cst = arith.constant dense<0.000000e+00> : vector<32x64xf32>
    %2 = tpu.matmul %0, %1, %cst {dimension_numbers = #tpu.dot_dimension_numbers<[1], [0], [0], [1], [0, 0, 1, 1], [], []>} : vector<32x64xf32>, vector<64x64xf32>, vector<32x64xf32> -> vector<32x64xf32>
    %c0_3 = arith.constant 0 : index
    %c0_4 = arith.constant 0 : index
    %3 = vector.load %arg3[%c0_3, %c0_4] : memref<1x64xf32, #tpu.memory_space<vmem>>, vector<1x64xf32>
    %4 = vector.broadcast %3 : vector<1x64xf32> to vector<32x64xf32>
    %5 = arith.addf %2, %4 : vector<32x64xf32>
    %c0_5 = arith.constant 0 : index
    %c0_6 = arith.constant 0 : index
    %6 = vector.load %arg4[%c0_5, %c0_6] : memref<32x64xf32, #tpu.memory_space<vmem>>, vector<32x64xf32>
    tpu.vector_store %arg4[%c0_5, %c0_6], %5 {strides = array<i32>} : memref<32x64xf32, #tpu.memory_space<vmem>>, vector<32x64xf32>,
    return
  }
  func.func @transform_0(%arg0: i32) -> (i32, i32) {
    %c0_i32 = arith.constant 0 : i32
    %c0_i32_0 = arith.constant 0 : i32
    return %arg0, %c0_i32 : i32, i32
  }
  func.func @transform_1(%arg0: i32) -> (i32, i32) {
    %c0_i32 = arith.constant 0 : i32
    %c0_i32_0 = arith.constant 0 : i32
    %c0_i32_1 = arith.constant 0 : i32
    return %c0_i32, %c0_i32_0 : i32, i32
  }
  func.func @transform_2(%arg0: i32) -> (i32, i32) {
    %c0_i32 = arith.constant 0 : i32
    %c0_i32_0 = arith.constant 0 : i32
    %c0_i32_1 = arith.constant 0 : i32
    return %c0_i32, %c0_i32_0 : i32, i32
  }
  func.func @transform_3(%arg0: i32) -> (i32, i32) {
    %c0_i32 = arith.constant 0 : i32
    %c0_i32_0 = arith.constant 0 : i32
    return %arg0, %c0_i32 : i32, i32
  }
}

</mosaic_0001>

<bundles_post_ra>
// kernel: tpu_custom_call.1
= control target key start
LH: loop header
LB: loop body
LE: loop exit
PB: predicated region body
PF: predicated region fallthrough
CT: control target
= control target key end

     0   :  { %8 = vsyncpa [#allocation3], 0  ;;  %s951_s0 = inlined_call_operand.hbm [shape: f32[64,64], index: 0, kind: input, shape index: {}]   ;;  %s952_s1 = inlined_call_operand.hbm [shape: f32[64,64], index: 1, kind: input, shape index: {}]   ;;  %s953_s2 = inlined_call_operand.vmem [shape: f32[1,64], index: 2, kind: input, shape index: {}]   ;;  %s954_s3 = inlined_call_operand.hbm [shape: f32[64,64], index: 3, kind: output, shape index: {}]  }
   0x1   :  { %10 = vsyncpa [#allocation3 + $0x1], 0 }
   0x2   :  { %11 = vsyncpa [#allocation6], 0 }
   0x3   :  { %12 = vsyncpa [#allocation4], 0 }
   0x4   :  { %14 = vsyncpa [#allocation4 + $0x1], 0  ;;  %s723_s12 = smov 0   ;;  %s725_s13 = smov 0  }
   0x5   :  { %s727_s14 = smov 0   ;;  %s729_s15 = smov 0  }
   0x6 LB: > { %s744_s16 = sadd.s32 4294967295, %s694_s15   ;;  %s424_s17 = sadd.s32 4294967294, %s694_s15   ;;  %s694_s15 = sphi %s729_s15, %s974_s15   ;;  %s690_s14 = sphi %s727_s14, %s973_s14   ;;  %s686_s13 = sphi %s725_s13, %s972_s13   ;;  %s682_s12 = sphi %s723_s12, %s971_s12  }
   0x7   : > { %p40_p0 = scmp.ne.s32.totalorder %s686_s13, %s682_s12  ;;  %p955_p1 = scmp.eq.s32.totalorder %s744_s16, 0 }
   0x8   : > { %p112_p3 = scmp.eq.s32.totalorder %s424_s17, 1  ;;  %p425_p5 = scmp.ge.s32.totalorder %s694_s15, 1 }
   0x9   : > { %p753_p4 = por %p955_p1, %p40_p0  ;;  %p119_p7 = scmp.lt.s32.totalorder %s694_s15, 3 }
   0xa   : > { %p758_p6 = por %p112_p3, %p40_p0  ;;  %s696_s21 = smov [#allocation5]  }
   0xb   : > { %s958_s18 = scalar_select %p753_p4, 1, 0 }
   0xc   : > { %s959_s19 = scalar_select %p758_p6, 1, 0 }
   0xd   : > { %p763_p8 = pnand %p425_p5, %p119_p7  ;;  %s131_s22 = sshll.u32 %s696_s21, 4  ;;  %s767_s22 = int_to_ptr.vmem [resolvable:$true] %s131_s22 }
   0xe   : > { %s779_s24 = sadd.s32 1, %s694_s15   ;;  %s27_s25 = sadd.s32 1, %s690_s14 }
   0xf   : > { %s960_s20 = scalar_select %p763_p8, 1, 0 }
  0x10   : > { %p513_p9 = pneg %p763_p8  ;;  %s24_s26 = ssub.s32 %s694_s15, %s779_s24 }
  0x11   : > { %s566_s29 = scalar_lea.hbm %s952_s1, 1024 }
  0x12   : > { %p774_p11 = pnand %p513_p9, %p955_p1  ;;  %p567_p12 = scmp.ne.s32.totalorder %s952_s1, %s566_s29 }
  0x13   : > { %p573_p5 = scmp.lt.u32.totalorder %s566_s29, %s952_s1 }
  0x14   : > { %p568_p13 = pneg %p774_p11 }
  0x16   : > { %p569_p0 = pnand %p568_p13, %p567_p12 }
  0x18   : > { %p570_p3 = pneg %p569_p0 }
  0x1a   : > { %p575_p7 = pnand %p573_p5, %p570_p3 }
  0x1c   : > { %578 = shalt.err (!%p575_p7)
}
  0x1d   : > { %s579_s7 = scalar_lea.vmem %s767_s22, 1024  ;;  %p587_p2 = scmp.lt.s32.totalorder %s767_s22, %s767_s22 }
  0x1e   : > { %p580_p9 = scmp.ne.s32.totalorder %s767_s22, %s579_s7  ;;  %p588_p6 = scmp.lt.s32.totalorder %s579_s7, %s579_s7 }
  0x20   : > { %p582_p10 = pnand %p580_p9, %p568_p13  ;;  %p589_p4 = por %p588_p6, %p587_p2 }
  0x22   : > { %p583_p1 = pneg %p582_p10 }
  0x24   : > { %p590_p8 = pnand %p589_p4, %p583_p1 }
  0x26   : > { %593 = shalt.err (!%p590_p8)
}
  0x27   : > { %s697_s8 = smov 128   ;;  %s698_s9 = smov 8  }
  0x28   : > { %516 = dma.hbm_to_vmem [thread:$0]  (!%p774_p11), %s952_s1, 1024, %s767_s22, [#allocation6], %s697_s8, %s697_s8, %s698_s9  }
  0x29   : > { %p25_p1 = scmp.eq.s32.totalorder %s24_s26, 0  ;;  %p34_p2 = scmp.ne.s32.totalorder %s690_s14, %s686_s13 }
  0x2a   : > { %p35_p4 = scmp.eq.s32.totalorder %s694_s15, 0  ;;  %p526_p6 = scmp.lt.s32.totalorder %s694_s15, 2 }
  0x2b   : > { %s813_s17 = scalar_select %p25_p1, %s690_s14, %s27_s25  }
  0x2c   : > { %p36_p8 = por %p35_p4, %p34_p2  ;;  %p962_p10 = scmp.eq.s32.totalorder %s744_s16, 1 }
  0x2d   : > { %s148_s23 = sand.u32 1, %s690_s14   ;;  %s445_s27 = sshll.u32 %s694_s15, 9 }
  0x2e   : > { %p817_p12 = por %p962_p10, %p34_p2  ;;  %s428_s28 = sshll.u32 %s148_s23, 5 }
  0x2f   : > { %s826_s4 = scalar_lea.hbm %s951_s0, %s445_s27  ;;  %s152_s22 = scalar_lea.vmem [#allocation2], %s428_s28 }
  0x30   : > { %s159_s25 = sshll.u32 %s152_s22, 4  ;;  %p828_p11 = pnand %p526_p6, %p36_p8  ;;  %s832_s25 = int_to_ptr.vmem [resolvable:$true] %s159_s25 }
  0x31   : > { %s834_s5 = scalar_lea.sflag [#allocation3], %s148_s23  ;;  %s594_s6 = scalar_lea.hbm %s826_s4, 512 }
  0x32   : > { %p595_p13 = scmp.ne.s32.totalorder %s826_s4, %s594_s6  ;;  %p596_p0 = pneg %p828_p11 }
  0x33   : > { %s599_s11 = scalar_lea.hbm %s951_s0, 1024  ;;  %p600_p7 = scmp.lt.u32.totalorder %s826_s4, %s951_s0 }
  0x34   : > { %p597_p3 = pnand %p596_p0, %p595_p13  ;;  %p601_p9 = scmp.lt.u32.totalorder %s599_s11, %s594_s6 }
  0x35   : > { %p603_p2 = scmp.lt.u32.totalorder %s594_s6, %s826_s4 }
  0x36   : > { %p598_p5 = pneg %p597_p3  ;;  %p602_p1 = por %p601_p9, %p600_p7 }
  0x38   : > { %p604_p4 = por %p603_p2, %p602_p1 }
  0x3a   : > { %p605_p6 = pnand %p604_p4, %p598_p5 }
  0x3c   : > { %608 = shalt.err (!%p605_p6)
}
  0x3d   : > { %s609_s23 = scalar_lea.vmem %s832_s25, 512  ;;  %s699_s29 = smov [#allocation2]  }
  0x3e   : > { %p610_p8 = scmp.ne.s32.totalorder %s832_s25, %s609_s23  ;;  %s614_s30 = sshll.u32 %s699_s29, 4  ;;  %s615_s30 = int_to_ptr.vmem [resolvable:$false] %s614_s30 }
  0x3f   : > { %s616_s22 = scalar_lea.vmem %s615_s30, 1024  ;;  %p617_p3 = scmp.lt.s32.totalorder %s832_s25, %s615_s30 }
  0x40   : > { %p612_p10 = pnand %p610_p8, %p596_p0  ;;  %p618_p7 = scmp.lt.s32.totalorder %s616_s22, %s609_s23 }
  0x42   : > { %p613_p13 = pneg %p612_p10  ;;  %p619_p9 = por %p618_p7, %p617_p3 }
  0x44   : > { %p620_p1 = pnand %p619_p9, %p613_p13 }
  0x46   : > { %623 = shalt.err (!%p620_p1)
}
  0x47   : > { %520 = dma.hbm_to_vmem [thread:$0]  (!%p828_p11), %s826_s4, 512, %s832_s25, %s834_s5, %s697_s8, %s697_s8, %s698_s9  }
  0x48   : > { %p965_p0 = scmp.ne.s32.totalorder %s960_s20, 0 }
  0x49   : > { %s868_s6 = sand.u32 (!%p965_p0), 1, %s686_s13   ;;  %p966_p5 = scmp.ne.s32.totalorder (!%p965_p0), %s958_s18, 0 }
  0x4a   : > { %171 = sbr.rel (%p965_p0) target bundleno = 334 (0x14e), region = 32  ;;  %s432_s7 = sshll.u32 (!%p965_p0), %s868_s6, 5 }
  0x4b   : > { %s174_s10 = scalar_lea.sflag (!%p965_p0), [#allocation3], %s868_s6  ;;  %s874_s26 = scalar_lea.vmem (!%p965_p0), [#allocation2], %s432_s7 }
  0x51   : > { %669 = dma.done.wait (%p966_p5), %s174_s10, 512  }
  0x52   : > { %671 = vsyncadd (%p966_p5), %s174_s10, 4294966784  ;;  %p967_p11 = scmp.eq.s32.totalorder %s744_s16, 0 }
  0x54   : > { %673 = dma.done.wait (%p967_p11), [#allocation6], 1024   ;;  %p968_p2 = pmov %p967_p11 }
  0x55   : > { %v210_v0 = vld [vmem:[#allocation5] sm:$0xff]  ;;  %v211_v1 = vld [vmem:[#allocation5 + $0x8] sm:$0xff]  ;;  %v212_v2 = vld [vmem:[#allocation5 + $0x10] sm:$0xff]  ;;  %vm225_vm0 = vcmask 523264   ;;  %s203_s18 = scalar_lea.vmem [#allocation7], %s432_s7  ;;  %s446_s4 = sshll.u32 %s744_s16, 9 }
  0x56   : > { %675 = vsyncadd (%p968_p2), [#allocation6], 4294966272  ;;  %v481_v3 = vpack.c.bf16 %v211_v1, %v210_v0  ;;  %v213_v4 = vld [vmem:[#allocation5 + $0x18] sm:$0xff]  ;;  %v214_v6 = vld [vmem:[#allocation5 + $0x20] sm:$0xff]  ;;  %s341_s20 = sshll.u32 %s203_s18, 4  ;;  %s903_s11 = scalar_lea.hbm %s954_s3, %s446_s4  ;;  %s898_s20 = int_to_ptr.vmem [resolvable:$true] %s341_s20 }
  0x57   : > { %v485_v5 = vpack.c.bf16 %v213_v4, %v212_v2  ;;  %v215_v7 = vld [vmem:[#allocation5 + $0x28] sm:$0xff]  ;;  %v206_v8 = vld [vmem:[%s874_s26] sm:$0xff]  ;;  %v208_v9 = vld [vmem:[%s874_s26 + $0x10] sm:$0xff]  ;;  %s328_s16 = scalar_lea.sflag [#allocation4], %s868_s6  ;;  %s624_s27 = scalar_lea.vmem %s898_s20, 512 }
  0x58   : > { %482 = vmatprep.subr.bf16.mxu0 %v481_v3  ;;  %497 = vmatprep.subr.bf16.mxu1 %v481_v3  ;;  %v489_v10 = vpack.c.bf16 %v215_v7, %v214_v6  ;;  %v216_v11 = vld [vmem:[#allocation5 + $0x30] sm:$0xff]  ;;  %v217_v12 = vld [vmem:[#allocation5 + $0x38] sm:$0xff]  ;;  %v207_v14 = vld [vmem:[%s874_s26 + $0x8] sm:$0xff]  ;;  %p625_p4 = scmp.ne.s32.totalorder %s898_s20, %s624_s27  ;;  %s700_s28 = smov [#allocation7]  }
  0x59   : > { %484 = vmatpush3.bf16.msra.mxu0 %v481_v3  ;;  %501 = vmatpush3.bf16.msra.mxu1 %v481_v3  ;;  %v493_v13 = vpack.c.bf16 %v217_v12, %v216_v11  ;;  %v209_v15 = vld [vmem:[%s874_s26 + $0x18] sm:$0xff]  ;;  %v435_v16 = vld [vmem:[%s953_s2] ss:$0 sm:$0xff]  ;;  %s628_s23 = sshll.u32 %s700_s28, 4  ;;  %s629_s23 = int_to_ptr.vmem [resolvable:$false] %s628_s23 }
  0x5a   : > { %486 = vmatprep.subr.bf16.mxu0 %v485_v5  ;;  %498 = vmatprep.subr.bf16.mxu1 %v485_v5  ;;  %p626_p6 = pnand %p625_p4, %p817_p12  ;;  %s630_s29 = scalar_lea.vmem %s629_s23, 1024 }
  0x5b   : > { %475 = vmatprep.mubr.msk.f32.mxu0 %vm225_vm0, %v206_v8  ;;  %478 = vmatprep.mubr.msk.f32.mxu1 %vm225_vm0, %v208_v9  ;;  %p631_p10 = scmp.lt.s32.totalorder %s898_s20, %s629_s23  ;;  %p632_p13 = scmp.lt.s32.totalorder %s630_s29, %s624_s27 }
  0x5c   : > { %p627_p8 = pneg %p626_p6 }
  0x5d   : > { %488 = vmatpush3.bf16.msra.mxu0 %v485_v5  ;;  %502 = vmatpush3.bf16.msra.mxu1 %v485_v5  ;;  %p633_p3 = por %p632_p13, %p631_p10 }
  0x5e   : > { %490 = vmatprep.subr.bf16.mxu0 %v489_v10  ;;  %499 = vmatprep.subr.bf16.mxu1 %v489_v10 }
  0x5f   : > { %p634_p7 = pnand %p633_p3, %p627_p8 }
  0x61   : > { %492 = vmatpush3.bf16.msra.mxu0 %v489_v10  ;;  %503 = vmatpush3.bf16.msra.mxu1 %v489_v10 }
  0x62   : > { %494 = vmatprep.subr.bf16.mxu0 %v493_v13  ;;  %500 = vmatprep.subr.bf16.mxu1 %v493_v13 }
  0x65   : > { %496 = vmatpush3.bf16.msra.mxu0 %v493_v13  ;;  %504 = vmatpush3.bf16.msra.mxu1 %v493_v13 }
  0x68   : > { %476 = vmatmul.mubr.msk.f32.vlgmr.msra.gmra.mrb[0].mxu0 %vm225_vm0, %v207_v14  ;;  %479 = vmatmul.mubr.msk.f32.vlgmr.msra.gmra.mrb[0].mxu1 %vm225_vm0, %v209_v15 }
 0x13b   : > { %v477_v17 = vpop.f32.mrb[0].mxu0  ;;  %v480_v18 = vpop.f32.mrb[0].mxu1 }
 0x13c   : > { %v310_v19 = vadd.f32 %v477_v17, %v435_v16  ;;  %v320_v20 = vadd.f32 %v480_v18, %v435_v16  ;;  %v304_v21 = vpop.f32.mrb[1].mxu0  ;;  %v314_v22 = vpop.f32.mrb[1].mxu1 }
 0x13d   : > { %v305_v23 = vadd.f32 %v435_v16, %v304_v21  ;;  %v315_v24 = vadd.f32 %v435_v16, %v314_v22 }
 0x13e   : > { %324 = vst.msk [vmem:[%s203_s18 + $0x8] sm:$0xff] %vm225_vm0, %v310_v19  ;;  %326 = vst.msk [vmem:[%s203_s18 + $0x18] sm:$0xff] %vm225_vm0, %v320_v20 }
 0x13f   : > { %323 = vst.msk [vmem:[%s203_s18] sm:$0xff] %vm225_vm0, %v305_v23  ;;  %325 = vst.msk [vmem:[%s203_s18 + $0x10] sm:$0xff] %vm225_vm0, %v315_v24 }
 0x140   : > { %637 = shalt.err (!%p634_p7)
}
 0x141   : > { %s638_s30 = scalar_lea.hbm %s903_s11, 512  ;;  %s642_s10 = scalar_lea.hbm %s954_s3, 1024 }
 0x142   : > { %p639_p9 = scmp.ne.s32.totalorder %s903_s11, %s638_s30  ;;  %p643_p5 = scmp.lt.u32.totalorder %s903_s11, %s954_s3 }
 0x143   : > { %p644_p11 = scmp.lt.u32.totalorder %s642_s10, %s638_s30  ;;  %p646_p4 = scmp.lt.u32.totalorder %s638_s30, %s903_s11 }
 0x144   : > { %p640_p1 = pnand %p639_p9, %p817_p12 }
 0x145   : > { %p645_p2 = por %p644_p11, %p643_p5 }
 0x146   : > { %p641_p0 = pneg %p640_p1 }
 0x147   : > { %p647_p6 = por %p646_p4, %p645_p2 }
 0x149   : > { %p648_p8 = pnand %p647_p6, %p641_p0 }
 0x14b   : > { %651 = shalt.err (!%p648_p8)
}
 0x14c   : > { %s701_s8 = smov 128   ;;  %s702_s9 = smov 8  }
 0x14d   : > { %511 = dma.vmem_to_hbm [thread:$0]  (%p817_p12), %s898_s20, 512, %s903_s11, %s328_s16, %s701_s8, %s701_s8, %s702_s9  }
 0x14e PF: > { %s356_s4 = sand.u32 1, %s682_s12   ;;  %p969_p10 = scmp.ne.s32.totalorder %s959_s19, 0 }
 0x14f   : > { %p970_p13 = scmp.ge.s32.totalorder %s694_s15, 2  ;;  %s357_s25 = scalar_lea.sflag [#allocation4], %s356_s4 }
 0x151   : > { %p522_p3 = pnand %p970_p13, %p969_p10 }
 0x153   : > { %677 = dma.done.wait (!%p522_p3), %s357_s25, 512  }
 0x154   : > { %679 = vsyncadd (!%p522_p3), %s357_s25, 4294966784  ;;  %p17_p7 = scmp.ge.s32.totalorder %s779_s24, 4   ;;  %s971_s12 = smov %s686_s13 }
 0x155   : > { %s972_s13 = smov %s690_s14  ;;  %s973_s14 = smov %s813_s17 }
 0x156   : > { %s974_s15 = smov %s779_s24  ;;  %19 = sbr.rel (!%p17_p7) target bundleno = 6 (0x6), region = 81 }
 0x15d   :  { %362 = vsyncpa [#allocation3], 1 }
 0x15e   :  { %364 = vsyncpa [#allocation3 + $0x1], 1 }
 0x15f   :  { %365 = vsyncpa [#allocation6], 1 }
 0x160   :  { %366 = vsyncpa [#allocation4], 1 }
 0x161   :  { %368 = vsyncpa [#allocation4 + $0x1], 1 }

</bundles_post_ra>
